<compile_context>
chip_gen: v5e
topology: v5e:2x2
jax: 0.10.0
libtpu: 0.0.40
codegen_flags: <defaults>
</compile_context>

<pallas_src>
import functools

import jax
import jax.numpy as jnp
from jax.experimental import pallas as pl
from jax.experimental.pallas import tpu as pltpu


def _round_up(x: int, m: int) -> int:
    return ((x + m - 1) // m) * m


def _gcn_kernel(a_ref, x_ref, w_ref, b_ref, out_ref, acc_ref):
    """Per grid step (i, j, k):
         acc(i) += A(i, k) @ X(k, :)              (bf16 MXU, f32 accumulate)
       at k == last:
         out(i, j) = acc(i) @ W(:, j) + bias(j)   (bf16 MXU, f32 accumulate)
    """
    k = pl.program_id(2)

    @pl.when(k == 0)
    def _init():
        acc_ref[...] = jnp.zeros_like(acc_ref)

    acc_ref[...] += jnp.dot(
        a_ref[...], x_ref[...], preferred_element_type=jnp.float32)

    @pl.when(k == pl.num_programs(2) - 1)
    def _finalize():
        ax = acc_ref[...].astype(w_ref.dtype)          # back to bf16 for the MXU
        out = jnp.dot(ax, w_ref[...], preferred_element_type=jnp.float32)
        out_ref[...] = (out + b_ref[...]).astype(out_ref.dtype)


@functools.partial(jax.jit, static_argnames=())
def gcn_forward(adjacency, input_feature, weight, bias=None):
    """GCN forward: adjacency @ (input_feature @ weight) + bias."""
    N = adjacency.shape[0]
    in_dim, out_dim = weight.shape
    assert adjacency.shape == (N, N)
    assert input_feature.shape == (N, in_dim)
    out_dtype = input_feature.dtype

    if bias is None:
        bias = jnp.zeros((out_dim,), dtype=jnp.float32)
    bias = bias.reshape(-1)

    # ---- lane-dense padded shapes -------------------------------------------
    din_p = _round_up(in_dim, 128)      # last dim of X, first dim of W
    dout_p = _round_up(out_dim, 128)    # output lanes: multiple of 128

    # Row/col tile for A: 256 when it divides cleanly (amortizes per-step cost
    # on big graphs), else 128 (minimal padding, v5e-friendly alignment).
    n_128 = _round_up(N, 128)
    tm = 256 if (n_128 % 256 == 0 and n_128 >= 256) else 128
    tk = tm
    n_p = _round_up(N, tm)

    # One output-column tile covers the whole (padded) out_dim for modest
    # widths, so the A@X accumulator is never recomputed across j. For very
    # wide out_dim fall back to 128-wide tiles (accepting gn>1 redundancy).
    tn = dout_p if dout_p <= 512 else 128

    # ---- zero-pad + bf16-cast operands (padding contributes exact zeros) ----
    a_p = jnp.zeros((n_p, n_p), jnp.bfloat16)
    a_p = a_p.at[:N, :N].set(adjacency.astype(jnp.bfloat16))
    x_p = jnp.zeros((n_p, din_p), jnp.bfloat16)
    x_p = x_p.at[:N, :in_dim].set(input_feature.astype(jnp.bfloat16))
    w_p = jnp.zeros((din_p, dout_p), jnp.bfloat16)
    w_p = w_p.at[:in_dim, :out_dim].set(weight.astype(jnp.bfloat16))
    b_p = jnp.zeros((1, dout_p), jnp.float32)
    b_p = b_p.at[0, :out_dim].set(bias.astype(jnp.float32))

    grid = (n_p // tm, dout_p // tn, n_p // tk)

    # Explicit VMEM budget (double-buffered inputs/outputs + f32 accumulator),
    # with headroom — keeps the same spec valid on v7x's 64 MiB VMEM.
    bf16, f32 = 2, 4
    tile_bytes = 2 * (tm * tk * bf16      # A tile
                      + tk * din_p * bf16  # X tile
                      + din_p * tn * bf16  # W tile
                      + tn * f32           # bias tile
                      + tm * tn * f32)     # out tile
    vmem_bytes = max(2 * (tile_bytes + tm * din_p * f32), 16 * 1024 * 1024)

    out_p = pl.pallas_call(
        _gcn_kernel,
        out_shape=jax.ShapeDtypeStruct((n_p, dout_p), out_dtype),
        grid_spec=pltpu.PrefetchScalarGridSpec(
            num_scalar_prefetch=0,
            grid=grid,
            in_specs=[
                pl.BlockSpec((tm, tk), lambda i, j, k: (i, k)),        # A
                pl.BlockSpec((tk, din_p), lambda i, j, k: (k, 0)),     # X
                pl.BlockSpec((din_p, tn), lambda i, j, k: (0, j)),     # W
                pl.BlockSpec((1, tn), lambda i, j, k: (0, j)),         # bias
            ],
            out_specs=pl.BlockSpec((tm, tn), lambda i, j, k: (i, j)),
            scratch_shapes=[pltpu.VMEM((tm, din_p), jnp.float32)],
        ),
        compiler_params=pltpu.CompilerParams(
            dimension_semantics=("parallel", "parallel", "arbitrary"),
            vmem_limit_bytes=int(vmem_bytes),
        ),
        # TODO(synk): on v7x, if the adjacency DMA stream is exposed
        # (mem-bound), bump its BlockSpec to pipeline_mode=pl.Buffered(3).
    )(a_p, x_p, w_p, b_p)

    return out_p[:N, :out_dim]


def init_gcn_params(key, input_dim, output_dim):
    """Kaiming-uniform-ish weight init (matches module shapes), zero bias."""
    bound = jnp.sqrt(6.0 / input_dim)
    weight = jax.random.uniform(
        key, (input_dim, output_dim), dtype=jnp.float32,
        minval=-bound, maxval=bound)
    bias = jnp.zeros((output_dim,), dtype=jnp.float32)
    return weight, bias


def _bf16_reference(adjacency, input_feature, weight, bias):
    """Plain-JAX reference with the same bf16-operand / f32-accumulate recipe."""
    a16 = adjacency.astype(jnp.bfloat16)
    x16 = input_feature.astype(jnp.bfloat16)
    w16 = weight.astype(jnp.bfloat16)
    ax = jnp.dot(a16, x16, preferred_element_type=jnp.float32)
    out = jnp.dot(ax.astype(jnp.bfloat16), w16, preferred_element_type=jnp.float32)
    return out + bias


def _run_case(key, n, in_dim, out_dim):
    k_adj, k_x, k_w = jax.random.split(key, 3)
    adj_raw = jax.random.uniform(k_adj, (n, n), dtype=jnp.float32)
    adjacency = (adj_raw + adj_raw.T) / (2.0 * n)          # symmetric, normalized-ish
    input_feature = jax.random.normal(k_x, (n, in_dim), dtype=jnp.float32)
    weight, bias = init_gcn_params(k_w, in_dim, out_dim)

    out = gcn_forward(adjacency, input_feature, weight, bias)
    out = jax.block_until_ready(out)
    assert out.shape == (n, out_dim)

    # Tight check vs. a bf16-operand reference (same numerics as the kernel).
    ref16 = _bf16_reference(adjacency, input_feature, weight, bias)
    assert jnp.allclose(out, ref16, atol=1e-2, rtol=1e-2)

    # Loose sanity check vs. the full-f32 reference.
    ref32 = adjacency @ (input_feature @ weight) + bias
    assert jnp.allclose(out, ref32, atol=5e-2, rtol=5e-2)
    return out


if __name__ == "__main__":
    key = jax.random.PRNGKey(0)
    k0, k1 = jax.random.split(key)

    # Small shapes matching the module's intent: N=16 nodes, 32 -> 64 features.
    _run_case(k0, n=16, in_dim=32, out_dim=64)

    # Second case exercising padding + multi-tile grid (k reduction > 1 block).
    _run_case(k1, n=300, in_dim=48, out_dim=130)

    print("KERNEL_OK")
</pallas_src>

<mosaic_0001>
module attributes {stable_mosaic.version = 11 : i64} {
  func.func @_gcn_kernel(%arg0: i32, %arg1: i32, %arg2: i32, %arg3: memref<128x128xbf16, #tpu.memory_space<vmem>>, %arg4: memref<128x128xbf16, #tpu.memory_space<vmem>>, %arg5: memref<128x128xbf16, #tpu.memory_space<vmem>>, %arg6: memref<1x128xf32, #tpu.memory_space<vmem>>, %arg7: memref<128x128xf32, #tpu.memory_space<vmem>>, %arg8: memref<128x128xf32, #tpu.memory_space<vmem>>) attributes {dimension_semantics = [#tpu.dimension_semantics<parallel>, #tpu.dimension_semantics<parallel>, #tpu.dimension_semantics<arbitrary>], iteration_bounds = array<i64: 1, 1, 1>, scalar_prefetch = 0 : i64, scratch_operands = 1 : i64, tpu.core_type = #tpu.core_type<tc>, window_params = [{transform_indices = @transform_0, window_bounds = array<i64: 128, 128>}, {transform_indices = @transform_1, window_bounds = array<i64: 128, 128>}, {transform_indices = @transform_2, window_bounds = array<i64: 128, 128>}, {transform_indices = @transform_3, window_bounds = array<i64: 1, 128>}, {transform_indices = @transform_4, window_bounds = array<i64: 128, 128>}]} {
    %c0_i32 = arith.constant 0 : i32
    %0 = arith.cmpi eq, %arg2, %c0_i32 : i32
    %1 = arith.extui %0 : i1 to i32
    %c0_i32_0 = arith.constant 0 : i32
    %2 = arith.cmpi ne, %1, %c0_i32_0 : i32
    scf.if %2 {
      %cst_10 = arith.constant 0.000000e+00 : f32
      %12 = vector.broadcast %cst_10 : f32 to vector<128x128xf32>
      %c0_11 = arith.constant 0 : index
      %c0_12 = arith.constant 0 : index
      %13 = vector.load %arg8[%c0_11, %c0_12] : memref<128x128xf32, #tpu.memory_space<vmem>>, vector<128x128xf32>
      tpu.vector_store %arg8[%c0_11, %c0_12], %12 {strides = array<i32>} : memref<128x128xf32, #tpu.memory_space<vmem>>, vector<128x128xf32>,
    } else {
    }
    %c0 = arith.constant 0 : index
    %c0_1 = arith.constant 0 : index
    %3 = vector.load %arg8[%c0, %c0_1] : memref<128x128xf32, #tpu.memory_space<vmem>>, vector<128x128xf32>
    %c0_2 = arith.constant 0 : index
    %c0_3 = arith.constant 0 : index
    %4 = vector.load %arg3[%c0_2, %c0_3] : memref<128x128xbf16, #tpu.memory_space<vmem>>, vector<128x128xbf16>
    %c0_4 = arith.constant 0 : index
    %c0_5 = arith.constant 0 : index
    %5 = vector.load %arg4[%c0_4, %c0_5] : memref<128x128xbf16, #tpu.memory_space<vmem>>, vector<128x128xbf16>
    %cst = arith.constant dense<0.000000e+00> : vector<128x128xf32>
    %6 = tpu.matmul %4, %5, %cst {dimension_numbers = #tpu.dot_dimension_numbers<[1], [0], [0], [1], [0, 0, 1, 1], [], []>} : vector<128x128xbf16>, vector<128x128xbf16>, vector<128x128xf32> -> vector<128x128xf32>
    %7 = arith.addf %3, %6 : vector<128x128xf32>
    %c0_6 = arith.constant 0 : index
    %c0_7 = arith.constant 0 : index
    %8 = vector.load %arg8[%c0_6, %c0_7] : memref<128x128xf32, #tpu.memory_space<vmem>>, vector<128x128xf32>
    tpu.vector_store %arg8[%c0_6, %c0_7], %7 {strides = array<i32>} : memref<128x128xf32, #tpu.memory_space<vmem>>, vector<128x128xf32>,
    %c0_i32_8 = arith.constant 0 : i32
    %9 = arith.cmpi eq, %arg2, %c0_i32_8 : i32
    %10 = arith.extui %9 : i1 to i32
    %c0_i32_9 = arith.constant 0 : i32
    %11 = arith.cmpi ne, %10, %c0_i32_9 : i32
    scf.if %11 {
      %c0_10 = arith.constant 0 : index
      %c0_11 = arith.constant 0 : index
      %12 = vector.load %arg8[%c0_10, %c0_11] : memref<128x128xf32, #tpu.memory_space<vmem>>, vector<128x128xf32>
      %13 = arith.truncf %12 : vector<128x128xf32> to vector<128x128xbf16>
      %c0_12 = arith.constant 0 : index
      %c0_13 = arith.constant 0 : index
      %14 = vector.load %arg5[%c0_12, %c0_13] : memref<128x128xbf16, #tpu.memory_space<vmem>>, vector<128x128xbf16>
      %cst_14 = arith.constant dense<0.000000e+00> : vector<128x128xf32>
      %15 = tpu.matmul %13, %14, %cst_14 {dimension_numbers = #tpu.dot_dimension_numbers<[1], [0], [0], [1], [0, 0, 1, 1], [], []>} : vector<128x128xbf16>, vector<128x128xbf16>, vector<128x128xf32> -> vector<128x128xf32>
      %c0_15 = arith.constant 0 : index
      %c0_16 = arith.constant 0 : index
      %16 = vector.load %arg6[%c0_15, %c0_16] : memref<1x128xf32, #tpu.memory_space<vmem>>, vector<1x128xf32>
      %17 = vector.broadcast %16 : vector<1x128xf32> to vector<128x128xf32>
      %18 = arith.addf %15, %17 : vector<128x128xf32>
      %c0_17 = arith.constant 0 : index
      %c0_18 = arith.constant 0 : index
      %19 = vector.load %arg7[%c0_17, %c0_18] : memref<128x128xf32, #tpu.memory_space<vmem>>, vector<128x128xf32>
      tpu.vector_store %arg7[%c0_17, %c0_18], %18 {strides = array<i32>} : memref<128x128xf32, #tpu.memory_space<vmem>>, vector<128x128xf32>,
    } else {
    }
    return
  }
  func.func @transform_0(%arg0: i32, %arg1: i32, %arg2: i32) -> (i32, i32) {
    %c0_i32 = arith.constant 0 : i32
    return %arg0, %arg2 : i32, i32
  }
  func.func @transform_1(%arg0: i32, %arg1: i32, %arg2: i32) -> (i32, i32) {
    %c0_i32 = arith.constant 0 : i32
    %c0_i32_0 = arith.constant 0 : i32
    return %arg2, %c0_i32 : i32, i32
  }
  func.func @transform_2(%arg0: i32, %arg1: i32, %arg2: i32) -> (i32, i32) {
    %c0_i32 = arith.constant 0 : i32
    %c0_i32_0 = arith.constant 0 : i32
    return %c0_i32, %arg1 : i32, i32
  }
  func.func @transform_3(%arg0: i32, %arg1: i32, %arg2: i32) -> (i32, i32) {
    %c0_i32 = arith.constant 0 : i32
    %c0_i32_0 = arith.constant 0 : i32
    return %c0_i32, %arg1 : i32, i32
  }
  func.func @transform_4(%arg0: i32, %arg1: i32, %arg2: i32) -> (i32, i32) {
    %c0_i32 = arith.constant 0 : i32
    return %arg0, %arg1 : i32, i32
  }
}

</mosaic_0001>

<bundles_post_ra>
// kernel: gcn_forward.1
= control target key start
LH: loop header
LB: loop body
LE: loop exit
PB: predicated region body
PF: predicated region fallthrough
CT: control target
= control target key end

     0   :  { %s711_s1 = inlined_call_operand.vmem [shape: bf16[128,128], index: 1, kind: input, shape index: {}]   ;;  %s712_s0 = inlined_call_operand.vmem [shape: bf16[128,128], index: 0, kind: input, shape index: {}]   ;;  %s713_s2 = inlined_call_operand.vmem [shape: bf16[128,128], index: 2, kind: input, shape index: {}]   ;;  %s714_s3 = inlined_call_operand.vmem [shape: f32[1,128], index: 3, kind: input, shape index: {}]   ;;  %s715_s4 = inlined_call_operand.vmem [shape: f32[128,128], index: 4, kind: output, shape index: {}]  }
   0x1   :  { %v537_v0 = vld [vmem:[%s711_s1 + $0x38] sm:$0xff]  ;;  %v536_v1 = vld [vmem:[%s711_s1 + $0x30] sm:$0xff]  ;;  %v535_v2 = vld [vmem:[%s711_s1 + $0x28] sm:$0xff] }
   0x2   :  { %181 = vmatpush.bf16.msra.mxu0 %v537_v0  ;;  %546 = vmatpush.bf16.msra.mxu2 %v537_v0  ;;  %v534_v3 = vld [vmem:[%s711_s1 + $0x20] sm:$0xff]  ;;  %v533_v4 = vld [vmem:[%s711_s1 + $0x18] sm:$0xff]  ;;  %v532_v5 = vld [vmem:[%s711_s1 + $0x10] sm:$0xff] }
   0x3   :  { %v531_v6 = vld [vmem:[%s711_s1 + $0x8] sm:$0xff]  ;;  %v530_v7 = vld [vmem:[%s711_s1] sm:$0xff]  ;;  %v545_v12 = vld [vmem:[%s713_s2 + $0x38] sm:$0xff] }
   0x4   :  { %v522_v8 = vld [vmem:[%s712_s0] sm:$0xff]  ;;  %v523_v10 = vld [vmem:[%s712_s0 + $0x8] sm:$0xff]  ;;  %357 = vmatpush.bf16.msra.mxu1 %v545_v12  ;;  %v544_v13 = vld [vmem:[%s713_s2 + $0x30] sm:$0xff]  ;;  %554 = vmatpush.bf16.msra.mxu3 %v545_v12 }
   0x5   :  { %v526_v9 = vld [vmem:[%s712_s0 + $0x20] sm:$0xff]  ;;  %v527_v11 = vld [vmem:[%s712_s0 + $0x28] sm:$0xff]  ;;  %v524_v16 = vld [vmem:[%s712_s0 + $0x10] sm:$0xff] }
   0x6   :  { %182 = vmatpush.bf16.msra.mxu0 %v536_v1  ;;  %547 = vmatpush.bf16.msra.mxu2 %v536_v1  ;;  %v543_v14 = vld [vmem:[%s713_s2 + $0x28] sm:$0xff]  ;;  %v542_v15 = vld [vmem:[%s713_s2 + $0x20] sm:$0xff]  ;;  %v528_v17 = vld [vmem:[%s712_s0 + $0x30] sm:$0xff] }
   0x7   :  { %v541_v18 = vld [vmem:[%s713_s2 + $0x18] sm:$0xff]  ;;  %v540_v21 = vld [vmem:[%s713_s2 + $0x10] sm:$0xff]  ;;  %v539_v22 = vld [vmem:[%s713_s2 + $0x8] sm:$0xff] }
   0x8   :  { %358 = vmatpush.bf16.msra.mxu1 %v544_v13  ;;  %555 = vmatpush.bf16.msra.mxu3 %v544_v13  ;;  %v525_v19 = vld [vmem:[%s712_s0 + $0x18] sm:$0xff]  ;;  %v538_v23 = vld [vmem:[%s713_s2] sm:$0xff] }
   0x9   :  { %v529_v20 = vld [vmem:[%s712_s0 + $0x38] sm:$0xff]  ;;  %v562_v48 = vld [vmem:[%s714_s3] ss:$0 sm:$0xff] }
   0xa   :  { %183 = vmatpush.bf16.msra.mxu0 %v535_v2  ;;  %548 = vmatpush.bf16.msra.mxu2 %v535_v2 }
   0xc   :  { %359 = vmatpush.bf16.msra.mxu1 %v543_v14  ;;  %556 = vmatpush.bf16.msra.mxu3 %v543_v14 }
   0xe   :  { %184 = vmatpush.bf16.msra.mxu0 %v534_v3  ;;  %549 = vmatpush.bf16.msra.mxu2 %v534_v3 }
  0x10   :  { %360 = vmatpush.bf16.msra.mxu1 %v542_v15  ;;  %557 = vmatpush.bf16.msra.mxu3 %v542_v15 }
  0x12   :  { %185 = vmatpush.bf16.msra.mxu0 %v533_v4  ;;  %550 = vmatpush.bf16.msra.mxu2 %v533_v4 }
  0x14   :  { %361 = vmatpush.bf16.msra.mxu1 %v541_v18  ;;  %558 = vmatpush.bf16.msra.mxu3 %v541_v18 }
  0x16   :  { %186 = vmatpush.bf16.msra.mxu0 %v532_v5  ;;  %551 = vmatpush.bf16.msra.mxu2 %v532_v5 }
  0x18   :  { %362 = vmatpush.bf16.msra.mxu1 %v540_v21  ;;  %559 = vmatpush.bf16.msra.mxu3 %v540_v21 }
  0x1a   :  { %187 = vmatpush.bf16.msra.mxu0 %v531_v6  ;;  %552 = vmatpush.bf16.msra.mxu2 %v531_v6 }
  0x1c   :  { %363 = vmatpush.bf16.msra.mxu1 %v539_v22  ;;  %560 = vmatpush.bf16.msra.mxu3 %v539_v22 }
  0x1e   :  { %188 = vmatpush.bf16.msra.mxu0 %v530_v7  ;;  %553 = vmatpush.bf16.msra.mxu2 %v530_v7 }
  0x20   :  { %364 = vmatpush.bf16.msra.mxu1 %v538_v23  ;;  %561 = vmatpush.bf16.msra.mxu3 %v538_v23 }
  0x21   :  { %189 = vmatmul.bf16.vlgmr.msra.gmra.mxu0 %v522_v8  ;;  %209 = vmatmul.bf16.vlgmr.msra.gmra.mxu2 %v526_v9 }
  0x31   :  { %194 = vmatmul.bf16.gmra.mxu0 %v523_v10  ;;  %214 = vmatmul.bf16.gmra.mxu2 %v527_v11 }
  0x41   :  { %199 = vmatmul.bf16.gmra.mxu0 %v524_v16  ;;  %219 = vmatmul.bf16.gmra.mxu2 %v528_v17 }
  0x51   :  { %204 = vmatmul.bf16.gmra.mxu0 %v525_v19  ;;  %224 = vmatmul.bf16.gmra.mxu2 %v529_v20 }
  0x9e   :  { %v190_v24 = vpop.f32.mrf.mxu0 }
  0xa4   :  { %v210_v25 = vpop.f32.mrf.mxu2 }
  0xa6   :  { %v192_v26 = vpop.f32.mrf.mxu0 }
  0xa7   :  { %v281_v27 = vpack.c.bf16 %v192_v26, %v190_v24 }
  0xa9   :  { %365 = vmatmul.bf16.vlgmr.msra.gmra.mxu1 %v281_v27 }
  0xac   :  { %v212_v28 = vpop.f32.mrf.mxu2 }
  0xad   :  { %v285_v29 = vpack.c.bf16 %v212_v28, %v210_v25 }
  0xae   :  { %v195_v30 = vpop.f32.mrf.mxu0 }
  0xaf   :  { %385 = vmatmul.bf16.vlgmr.msra.gmra.mxu3 %v285_v29 }
  0xb4   :  { %v215_v31 = vpop.f32.mrf.mxu2 }
  0xb6   :  { %v197_v32 = vpop.f32.mrf.mxu0 }
  0xb7   :  { %v282_v33 = vpack.c.bf16 %v197_v32, %v195_v30 }
  0xb9   :  { %370 = vmatmul.bf16.gmra.mxu1 %v282_v33 }
  0xbc   :  { %v217_v34 = vpop.f32.mrf.mxu2 }
  0xbd   :  { %v286_v35 = vpack.c.bf16 %v217_v34, %v215_v31 }
  0xbe   :  { %v200_v36 = vpop.f32.mrf.mxu0 }
  0xbf   :  { %390 = vmatmul.bf16.gmra.mxu3 %v286_v35 }
  0xc4   :  { %v220_v37 = vpop.f32.mrf.mxu2 }
  0xc6   :  { %v202_v38 = vpop.f32.mrf.mxu0 }
  0xc7   :  { %v283_v39 = vpack.c.bf16 %v202_v38, %v200_v36 }
  0xc9   :  { %375 = vmatmul.bf16.gmra.mxu1 %v283_v39 }
  0xcc   :  { %v222_v40 = vpop.f32.mrf.mxu2 }
  0xcd   :  { %v287_v41 = vpack.c.bf16 %v222_v40, %v220_v37 }
  0xce   :  { %v205_v42 = vpop.f32.mrf.mxu0 }
  0xcf   :  { %395 = vmatmul.bf16.gmra.mxu3 %v287_v41 }
  0xd4   :  { %v225_v43 = vpop.f32.mrf.mxu2 }
  0xd6   :  { %v207_v44 = vpop.f32.mrf.mxu0 }
  0xd7   :  { %v284_v45 = vpack.c.bf16 %v207_v44, %v205_v42 }
  0xd9   :  { %380 = vmatmul.bf16.gmra.mxu1 %v284_v45 }
  0xdc   :  { %v227_v46 = vpop.f32.mrf.mxu2 }
  0xdd   :  { %v288_v47 = vpack.c.bf16 %v227_v46, %v225_v43 }
  0xdf   :  { %400 = vmatmul.bf16.gmra.mxu3 %v288_v47 }
 0x126   :  { %v366_v49 = vpop.f32.mrf.mxu1 }
 0x127   :  { %v367_v50 = vadd.f32 %v562_v48, %v366_v49 }
 0x129   :  { %406 = vst [vmem:[%s715_s4] sm:$0xff] %v367_v50 }
 0x12e   :  { %v368_v51 = vpop.f32.mrf.mxu1 }
 0x12f   :  { %v369_v52 = vadd.f32 %v562_v48, %v368_v51 }
 0x131   :  { %407 = vst [vmem:[%s715_s4 + $0x8] sm:$0xff] %v369_v52 }
 0x132   :  { %v386_v53 = vpop.f32.mrf.mxu3 }
 0x133   :  { %v387_v54 = vadd.f32 %v562_v48, %v386_v53 }
 0x135   :  { %414 = vst [vmem:[%s715_s4 + $0x40] sm:$0xff] %v387_v54 }
 0x136   :  { %v371_v55 = vpop.f32.mrf.mxu1 }
 0x137   :  { %v372_v56 = vadd.f32 %v562_v48, %v371_v55 }
 0x139   :  { %408 = vst [vmem:[%s715_s4 + $0x10] sm:$0xff] %v372_v56 }
 0x13a   :  { %v388_v57 = vpop.f32.mrf.mxu3 }
 0x13b   :  { %v389_v58 = vadd.f32 %v562_v48, %v388_v57 }
 0x13d   :  { %415 = vst [vmem:[%s715_s4 + $0x48] sm:$0xff] %v389_v58 }
 0x13e   :  { %v373_v59 = vpop.f32.mrf.mxu1 }
 0x13f   :  { %v374_v60 = vadd.f32 %v562_v48, %v373_v59 }
 0x141   :  { %409 = vst [vmem:[%s715_s4 + $0x18] sm:$0xff] %v374_v60 }
 0x142   :  { %v391_v61 = vpop.f32.mrf.mxu3 }
 0x143   :  { %v392_v62 = vadd.f32 %v562_v48, %v391_v61 }
 0x145   :  { %416 = vst [vmem:[%s715_s4 + $0x50] sm:$0xff] %v392_v62 }
 0x146   :  { %v376_v63 = vpop.f32.mrf.mxu1 }
 0x147   :  { %v377_v0 = vadd.f32 %v562_v48, %v376_v63 }
 0x149   :  { %410 = vst [vmem:[%s715_s4 + $0x20] sm:$0xff] %v377_v0 }
 0x14a   :  { %v393_v1 = vpop.f32.mrf.mxu3 }
 0x14b   :  { %v394_v2 = vadd.f32 %v562_v48, %v393_v1 }
 0x14d   :  { %417 = vst [vmem:[%s715_s4 + $0x58] sm:$0xff] %v394_v2 }
 0x14e   :  { %v378_v3 = vpop.f32.mrf.mxu1 }
 0x14f   :  { %v379_v4 = vadd.f32 %v562_v48, %v378_v3 }
 0x151   :  { %411 = vst [vmem:[%s715_s4 + $0x28] sm:$0xff] %v379_v4 }
 0x152   :  { %v396_v5 = vpop.f32.mrf.mxu3 }
 0x153   :  { %v397_v6 = vadd.f32 %v562_v48, %v396_v5 }
 0x155   :  { %418 = vst [vmem:[%s715_s4 + $0x60] sm:$0xff] %v397_v6 }
 0x156   :  { %v381_v7 = vpop.f32.mrf.mxu1 }
 0x157   :  { %v382_v8 = vadd.f32 %v562_v48, %v381_v7 }
 0x159   :  { %412 = vst [vmem:[%s715_s4 + $0x30] sm:$0xff] %v382_v8 }
 0x15a   :  { %v398_v9 = vpop.f32.mrf.mxu3 }
 0x15b   :  { %v399_v10 = vadd.f32 %v562_v48, %v398_v9 }
 0x15d   :  { %419 = vst [vmem:[%s715_s4 + $0x68] sm:$0xff] %v399_v10 }
 0x15e   :  { %v383_v11 = vpop.f32.mrf.mxu1 }
 0x15f   :  { %v384_v12 = vadd.f32 %v562_v48, %v383_v11 }
 0x161   :  { %413 = vst [vmem:[%s715_s4 + $0x38] sm:$0xff] %v384_v12 }
 0x162   :  { %v401_v13 = vpop.f32.mrf.mxu3 }
 0x163   :  { %v402_v14 = vadd.f32 %v562_v48, %v401_v13 }
 0x165   :  { %420 = vst [vmem:[%s715_s4 + $0x70] sm:$0xff] %v402_v14 }
 0x16a   :  { %v403_v15 = vpop.f32.mrf.mxu3 }
 0x16b   :  { %v404_v16 = vadd.f32 %v562_v48, %v403_v15 }
 0x16d   :  { %421 = vst [vmem:[%s715_s4 + $0x78] sm:$0xff] %v404_v16 }

</bundles_post_ra>
